<compile_context>
chip_gen: v7x
topology: tpu7x:2x2x1
jax: 0.10.0
libtpu: 0.0.40
codegen_flags: <defaults>
</compile_context>

<pallas_src>
import functools

import jax
import jax.numpy as jnp
from jax.experimental import pallas as pl
from jax.experimental.pallas import tpu as pltpu

NEG_SLOPE = 0.01   # nn.LeakyReLU() default negative_slope
BN_EPS = 1e-5      # nn.BatchNorm2d default eps


def _cdiv(a, b):
    return (a + b - 1) // b


def _vmem_budget():
    """Per-core VMEM sizing derived from the running chip (v5e/v6e: 128 MiB, v7x: 64 MiB/TC)."""
    cap = 64 * 2 ** 20
    try:
        info = pltpu.get_tpu_info()
        cap = int(getattr(info, "vmem_capacity_bytes", cap))
    except Exception:
        pass
    budget = min(cap // 2, 48 * 2 ** 20)        # ~32 MiB on v7x, 48 MiB on v5e/v6e
    limit = min((cap * 3) // 4, 96 * 2 ** 20)   # scoped VMEM limit handed to Mosaic
    return budget, limit


# ---------------- Pallas kernels ----------------

def _make_conv_stats_kernel(taps, w1, lw):
    """Pass 1: 9-tap accumulated matmul + fused per-tile batch statistics."""

    def kernel(w_ref, mask_ref, p00_ref, p01_ref, p10_ref, p11_ref,
               y_ref, st_ref, acc_ref):
        phase = {(0, 0): p00_ref, (0, 1): p01_ref,
                 (1, 0): p10_ref, (1, 1): p11_ref}
        for t, (kh, kw) in enumerate(taps):
            src = phase[(kh % 2, kw % 2)]
            off = (kh // 2) * w1 + (kw // 2)          # flat tap offset (static)
            contrib = jnp.dot(w_ref[t], src[:, off:off + lw],
                              preferred_element_type=jnp.float32)
            if t == 0:
                acc_ref[...] = contrib
            else:
                acc_ref[...] += contrib
        yv = acc_ref[...]                             # f32, streamed from VMEM scratch
        y_ref[...] = yv.astype(y_ref.dtype)

        # fused batch statistics over the valid (non-garbage / non-padded) positions
        m = mask_ref[...]                             # (1, lw): 1.0 valid, 0.0 otherwise
        ym = yv * m
        st_ref[:, 0:1] = jnp.sum(ym, axis=-1, keepdims=True)
        st_ref[:, 1:2] = jnp.sum(ym * yv, axis=-1, keepdims=True)

    return kernel


def _bn_lrelu_kernel(y_ref, ps_ref, o_ref):
    """Pass 2: fused BatchNorm affine + LeakyReLU.  ps_ref: (1, Cout, 2)."""
    scale = ps_ref[:, :, 0:1]                         # (1, Cout, 1)
    shift = ps_ref[:, :, 1:2]
    z = y_ref[...].astype(jnp.float32) * scale + shift
    o_ref[...] = jnp.where(z > 0, z, NEG_SLOPE * z)


# ---------------- wrapper ----------------

def downsample_forward(x, w, b=None, gamma=None, beta=None, *, stride=2,
                       padding=1, matmul_dtype=jnp.bfloat16, y_dtype=None):
    """x: (N, Cin, H, W) f32; w: (Cout, Cin, 3, 3).  Returns (N, Cout, Hout, Wout) f32.

    Conv bias `b` is accepted for API parity but intentionally NOT applied: a
    per-channel constant before training-mode BatchNorm cancels exactly.
    """
    del b  # cancels under BatchNorm with batch statistics
    N, Cin, H, W = x.shape
    Cout, wcin, KH, KW = w.shape
    assert wcin == Cin
    # TODO(synk): the phase decomposition is specialised to the module defaults
    # kernel=3, stride=2, padding=1; other configs are not implemented.
    assert (KH, KW) == (3, 3) and stride == 2 and padding == 1

    Hout = (H + 2 * padding - KH) // stride + 1
    Wout = (W + 2 * padding - KW) // stride + 1
    W1 = Wout + 1                        # per-output-row width incl. 1 garbage column
    if y_dtype is None:
        y_dtype = matmul_dtype           # bf16 y halves pass-1 write + pass-2 read
    mm_b = jnp.dtype(matmul_dtype).itemsize
    y_b = jnp.dtype(y_dtype).itemsize

    if gamma is None:
        gamma = jnp.ones((Cout,), jnp.float32)
    if beta is None:
        beta = jnp.zeros((Cout,), jnp.float32)

    budget, vmem_limit = _vmem_budget()

    # ---- choose output rows per tile (R) under the VMEM budget ----
    def p1_bytes(r):
        pb = (r + 1) * W1 + 1
        lw = r * W1
        return (2 * (4 * Cin * pb * mm_b        # double-buffered phase blocks
                     + Cout * lw * y_b          # y output block
                     + Cout * 2 * 4             # stats block
                     + lw * 4)                  # mask block
                + 2 * 9 * Cout * Cin * mm_b     # resident weights
                + Cout * lw * 4)                # f32 accumulator scratch

    R = Hout
    while R > 1 and p1_bytes(R) > budget:
        R -= 1
    NB = _cdiv(Hout, R)
    # nudge the tile count even so v7x's two TensorCores both get work
    if (N * NB) % 2 == 1 and NB < Hout:
        NB += 1
        R = _cdiv(Hout, NB)
        NB = _cdiv(Hout, R)
    PB = (R + 1) * W1 + 1                # +1: last tap of the last row reads one past
    LW = R * W1
    NT = N * NB

    # ---- wrapper prep: padded 4-phase, row-blocked (1-row halo duplicated) slabs ----
    xp = jnp.pad(x, ((0, 0), (0, 0), (padding, padding), (padding, padding)))
    rows_needed = NB * R + 1
    phases = []
    for ph in range(2):
        for pw in range(2):
            p = xp[:, :, ph::stride, pw::stride]            # (N, Cin, hp, wp)
            hp, wp = p.shape[2], p.shape[3]
            p = jnp.pad(p, ((0, 0), (0, 0),
                            (0, max(0, rows_needed - hp)),
                            (0, max(0, W1 - wp))))
            # block rb covers phase rows [rb*R, rb*R + R + 1)  (duplicated halo row)
            pb = jnp.stack(
                [p[:, :, rb * R: rb * R + R + 1, :] for rb in range(NB)], axis=1)
            pb = pb.reshape(N, NB, Cin, (R + 1) * W1)
            pb = jnp.pad(pb, ((0, 0), (0, 0), (0, 0), (0, 1)))   # -> PB
            phases.append(pb.astype(matmul_dtype))
    p00, p01, p10, p11 = phases

    w_taps = jnp.transpose(w, (2, 3, 0, 1)).reshape(KH * KW, Cout, Cin)
    w_taps = w_taps.astype(matmul_dtype)

    # validity mask per row-block: 1.0 on real output pixels, 0.0 on the garbage
    # column (ow == Wout) and on padded rows (>= Hout).  Tiny; read per tile.
    row_idx = jnp.arange(NB * R).reshape(NB, R)
    col_idx = jnp.arange(W1)
    valid = (row_idx[:, :, None] < Hout) & (col_idx[None, None, :] < Wout)
    mask = valid.reshape(NB, 1, LW).astype(jnp.float32)

    taps = [(kh, kw) for kh in range(KH) for kw in range(KW)]
    kernel1 = _make_conv_stats_kernel(taps, W1, LW)

    cparams1 = pltpu.CompilerParams(
        dimension_semantics=("parallel", "parallel"),
        vmem_limit_bytes=vmem_limit,
    )
    phase_bytes = 4 * N * NB * Cin * PB * mm_b
    cost1 = pl.CostEstimate(
        flops=2 * 9 * Cin * Cout * NT * LW,
        transcendentals=0,
        bytes_accessed=(phase_bytes + 9 * Cout * Cin * mm_b + NT * LW * 4
                        + NT * Cout * LW * y_b + NT * Cout * 2 * 4),
    )

    phase_spec = pl.BlockSpec((None, None, Cin, PB), lambda n, rb: (n, rb, 0, 0))
    y_t, stats = pl.pallas_call(
        kernel1,
        out_shape=(
            jax.ShapeDtypeStruct((N, NB, Cout, LW), y_dtype),
            jax.ShapeDtypeStruct((N, NB, Cout, 2), jnp.float32),
        ),
        grid=(N, NB),
        in_specs=[
            pl.BlockSpec((KH * KW, Cout, Cin), lambda n, rb: (0, 0, 0)),
            pl.BlockSpec((None, 1, LW), lambda n, rb: (rb, 0, 0)),
            phase_spec, phase_spec, phase_spec, phase_spec,
        ],
        out_specs=(
            pl.BlockSpec((None, None, Cout, LW), lambda n, rb: (n, rb, 0, 0)),
            pl.BlockSpec((None, None, Cout, 2), lambda n, rb: (n, rb, 0, 0)),
        ),
        scratch_shapes=[pltpu.VMEM((Cout, LW), jnp.float32)],
        compiler_params=cparams1,
        cost_estimate=cost1,
    )(w_taps, mask, p00, p01, p10, p11)

    # ---- tiny reduction -> BN affine coefficients (wrapper; negligible bytes) ----
    Mvalid = N * Hout * Wout
    s = jnp.sum(stats[..., 0], axis=(0, 1))              # (Cout,)
    sq = jnp.sum(stats[..., 1], axis=(0, 1))
    mean = s / Mvalid
    # TODO(synk): E[y^2]-mean^2 in f32 is cancellation-prone for very large |mean|;
    # switch to a shifted / Welford reduction if real activations require it.
    var = jnp.maximum(sq / Mvalid - mean * mean, 0.0)
    inv_std = jax.lax.rsqrt(var + BN_EPS)
    scale = gamma.astype(jnp.float32) * inv_std
    shift = beta.astype(jnp.float32) - mean * scale
    bn_params = jnp.stack([scale, shift], axis=-1).reshape(1, Cout, 2)

    # ---- pass 2: fused BN affine + LeakyReLU (streaming, own larger tile) ----
    y_r = y_t.reshape(NT, Cout, LW)                      # free metadata reshape

    def p2_bytes(g):
        return 2 * g * Cout * LW * (y_b + 4) + 2 * Cout * 2 * 4

    G = 1
    for g in range(NT, 0, -1):
        if NT % g == 0 and p2_bytes(g) <= budget:
            G = g
            break
    cost2 = pl.CostEstimate(
        flops=4 * NT * Cout * LW,
        transcendentals=0,
        bytes_accessed=NT * Cout * LW * (y_b + 4) + Cout * 2 * 4,
    )
    alias = {0: 0} if jnp.dtype(y_dtype) == jnp.dtype(jnp.float32) else {}
    out_r = pl.pallas_call(
        _bn_lrelu_kernel,
        out_shape=jax.ShapeDtypeStruct((NT, Cout, LW), jnp.float32),
        grid=(NT // G,),
        in_specs=[
            pl.BlockSpec((G, Cout, LW), lambda i: (i, 0, 0)),
            pl.BlockSpec((1, Cout, 2), lambda i: (0, 0, 0)),
        ],
        out_specs=pl.BlockSpec((G, Cout, LW), lambda i: (i, 0, 0)),
        compiler_params=pltpu.CompilerParams(
            dimension_semantics=("parallel",),
            vmem_limit_bytes=vmem_limit,
        ),
        cost_estimate=cost2,
        input_output_aliases=alias,
    )(y_r, bn_params)

    # ---- drop garbage column / padded rows, back to NCHW (single output pass) ----
    out = out_r.reshape(N, NB, Cout, R, W1)[..., :Wout]  # (N, NB, Cout, R, Wout)
    out = jnp.transpose(out, (0, 2, 1, 3, 4)).reshape(N, Cout, NB * R, Wout)
    return out[:, :, :Hout, :]


# ---------------- pure-JAX reference for the correctness check ----------------

def _reference(x, w, b, gamma, beta, stride=2, padding=1):
    y = jax.lax.conv_general_dilated(
        x, w, window_strides=(stride, stride),
        padding=((padding, padding), (padding, padding)),
        dimension_numbers=("NCHW", "OIHW", "NCHW"))
    y = y + b.reshape(1, -1, 1, 1)
    mean = y.mean(axis=(0, 2, 3), keepdims=True)
    var = ((y - mean) ** 2).mean(axis=(0, 2, 3), keepdims=True)
    z = gamma.reshape(1, -1, 1, 1) * (y - mean) / jnp.sqrt(var + BN_EPS) \
        + beta.reshape(1, -1, 1, 1)
    return jnp.where(z > 0, z, NEG_SLOPE * z)


if __name__ == "__main__":
    key = jax.random.PRNGKey(0)
    k_x, k_w, k_b = jax.random.split(key, 3)

    N, Cin, H, W = 2, 4, 16, 16
    Cout = 8

    x = jax.random.normal(k_x, (N, Cin, H, W), dtype=jnp.float32)
    w = jax.random.normal(k_w, (Cout, Cin, 3, 3), dtype=jnp.float32) * 0.1
    b = jax.random.normal(k_b, (Cout,), dtype=jnp.float32) * 0.1
    gamma = jnp.ones((Cout,), dtype=jnp.float32)   # BatchNorm2d default weight
    beta = jnp.zeros((Cout,), dtype=jnp.float32)   # BatchNorm2d default bias

    ref = _reference(x, w, b, gamma, beta)

    # exactness path: f32 streams, tight tolerance
    fwd_f32 = jax.jit(functools.partial(downsample_forward,
                                        matmul_dtype=jnp.float32))
    out32 = jax.block_until_ready(fwd_f32(x, w, b, gamma, beta))
    assert out32.shape == (N, Cout, 8, 8), out32.shape
    assert jnp.allclose(out32, ref, rtol=1e-4, atol=1e-4), \
        float(jnp.max(jnp.abs(out32 - ref)))

    # default fast path: bf16 phase/weight/y streams, f32 accumulation + stats
    fwd_bf16 = jax.jit(downsample_forward)
    out16 = jax.block_until_ready(fwd_bf16(x, w, b, gamma, beta))
    assert out16.shape == (N, Cout, 8, 8), out16.shape
    assert jnp.allclose(out16, ref, rtol=3e-2, atol=3e-2), \
        float(jnp.max(jnp.abs(out16 - ref)))

    print("KERNEL_OK")
</pallas_src>

<mosaic_0001>
module attributes {stable_mosaic.version = 11 : i64} {
  func.func @kernel(%arg0: i32, %arg1: i32, %arg2: memref<9x8x4xf32, #tpu.memory_space<vmem>>, %arg3: memref<1x1x72xf32, #tpu.memory_space<vmem>>, %arg4: memref<1x1x4x82xf32, #tpu.memory_space<vmem>>, %arg5: memref<1x1x4x82xf32, #tpu.memory_space<vmem>>, %arg6: memref<1x1x4x82xf32, #tpu.memory_space<vmem>>, %arg7: memref<1x1x4x82xf32, #tpu.memory_space<vmem>>, %arg8: memref<1x1x8x72xf32, #tpu.memory_space<vmem>>, %arg9: memref<1x1x8x2xf32, #tpu.memory_space<vmem>>, %arg10: memref<8x72xf32, #tpu.memory_space<vmem>>) attributes {dimension_semantics = [#tpu.dimension_semantics<parallel>, #tpu.dimension_semantics<parallel>], iteration_bounds = array<i64: 2, 1>, scalar_prefetch = 0 : i64, scratch_operands = 1 : i64, tpu.core_type = #tpu.core_type<tc>, window_params = [{pipeline_mode = #tpu.pipeline_mode<synchronous>, transform_indices = @transform_0, window_bounds = array<i64: 9, 8, 4>}, {transform_indices = @transform_1, window_bounds = array<i64: 1, 1, 72>}, {transform_indices = @transform_2, window_bounds = array<i64: 1, 1, 4, 82>}, {transform_indices = @transform_3, window_bounds = array<i64: 1, 1, 4, 82>}, {transform_indices = @transform_4, window_bounds = array<i64: 1, 1, 4, 82>}, {transform_indices = @transform_5, window_bounds = array<i64: 1, 1, 4, 82>}, {transform_indices = @transform_6, window_bounds = array<i64: 1, 1, 8, 72>}, {transform_indices = @transform_7, window_bounds = array<i64: 1, 1, 8, 2>}]} {
    %c0 = arith.constant 0 : index
    %c0_0 = arith.constant 0 : index
    %c0_1 = arith.constant 0 : index
    %0 = vector.load %arg2[%c0, %c0_0, %c0_1] : memref<9x8x4xf32, #tpu.memory_space<vmem>>, vector<1x8x4xf32>
    %1 = vector.shape_cast %0 : vector<1x8x4xf32> to vector<8x4xf32>
    %c0_2 = arith.constant 0 : index
    %c0_3 = arith.constant 0 : index
    %c0_4 = arith.constant 0 : index
    %c0_5 = arith.constant 0 : index
    %2 = vector.load %arg4[%c0_2, %c0_3, %c0_4, %c0_5] : memref<1x1x4x82xf32, #tpu.memory_space<vmem>>, vector<1x1x4x72xf32>
    %3 = vector.shape_cast %2 : vector<1x1x4x72xf32> to vector<4x72xf32>
    %cst = arith.constant dense<0.000000e+00> : vector<8x72xf32>
    %4 = tpu.matmul %1, %3, %cst {dimension_numbers = #tpu.dot_dimension_numbers<[1], [0], [0], [1], [0, 0, 1, 1], [], []>} : vector<8x4xf32>, vector<4x72xf32>, vector<8x72xf32> -> vector<8x72xf32>
    %c0_6 = arith.constant 0 : index
    %c0_7 = arith.constant 0 : index
    %5 = vector.load %arg10[%c0_6, %c0_7] : memref<8x72xf32, #tpu.memory_space<vmem>>, vector<8x72xf32>
    tpu.vector_store %arg10[%c0_6, %c0_7], %4 {strides = array<i32>} : memref<8x72xf32, #tpu.memory_space<vmem>>, vector<8x72xf32>,
    %c1 = arith.constant 1 : index
    %c0_8 = arith.constant 0 : index
    %c0_9 = arith.constant 0 : index
    %6 = vector.load %arg2[%c1, %c0_8, %c0_9] : memref<9x8x4xf32, #tpu.memory_space<vmem>>, vector<1x8x4xf32>
    %7 = vector.shape_cast %6 : vector<1x8x4xf32> to vector<8x4xf32>
    %c0_10 = arith.constant 0 : index
    %c0_11 = arith.constant 0 : index
    %c0_12 = arith.constant 0 : index
    %c0_13 = arith.constant 0 : index
    %8 = vector.load %arg5[%c0_10, %c0_11, %c0_12, %c0_13] : memref<1x1x4x82xf32, #tpu.memory_space<vmem>>, vector<1x1x4x72xf32>
    %9 = vector.shape_cast %8 : vector<1x1x4x72xf32> to vector<4x72xf32>
    %cst_14 = arith.constant dense<0.000000e+00> : vector<8x72xf32>
    %10 = tpu.matmul %7, %9, %cst_14 {dimension_numbers = #tpu.dot_dimension_numbers<[1], [0], [0], [1], [0, 0, 1, 1], [], []>} : vector<8x4xf32>, vector<4x72xf32>, vector<8x72xf32> -> vector<8x72xf32>
    %c0_15 = arith.constant 0 : index
    %c0_16 = arith.constant 0 : index
    %11 = vector.load %arg10[%c0_15, %c0_16] : memref<8x72xf32, #tpu.memory_space<vmem>>, vector<8x72xf32>
    %12 = arith.addf %11, %10 : vector<8x72xf32>
    %c0_17 = arith.constant 0 : index
    %c0_18 = arith.constant 0 : index
    %13 = vector.load %arg10[%c0_17, %c0_18] : memref<8x72xf32, #tpu.memory_space<vmem>>, vector<8x72xf32>
    tpu.vector_store %arg10[%c0_17, %c0_18], %12 {strides = array<i32>} : memref<8x72xf32, #tpu.memory_space<vmem>>, vector<8x72xf32>,
    %c2 = arith.constant 2 : index
    %c0_19 = arith.constant 0 : index
    %c0_20 = arith.constant 0 : index
    %14 = vector.load %arg2[%c2, %c0_19, %c0_20] : memref<9x8x4xf32, #tpu.memory_space<vmem>>, vector<1x8x4xf32>
    %15 = vector.shape_cast %14 : vector<1x8x4xf32> to vector<8x4xf32>
    %c0_21 = arith.constant 0 : index
    %c0_22 = arith.constant 0 : index
    %c0_23 = arith.constant 0 : index
    %c1_24 = arith.constant 1 : index
    %16 = vector.load %arg4[%c0_21, %c0_22, %c0_23, %c1_24] : memref<1x1x4x82xf32, #tpu.memory_space<vmem>>, vector<1x1x4x72xf32>
    %17 = vector.shape_cast %16 : vector<1x1x4x72xf32> to vector<4x72xf32>
    %cst_25 = arith.constant dense<0.000000e+00> : vector<8x72xf32>
    %18 = tpu.matmul %15, %17, %cst_25 {dimension_numbers = #tpu.dot_dimension_numbers<[1], [0], [0], [1], [0, 0, 1, 1], [], []>} : vector<8x4xf32>, vector<4x72xf32>, vector<8x72xf32> -> vector<8x72xf32>
    %c0_26 = arith.constant 0 : index
    %c0_27 = arith.constant 0 : index
    %19 = vector.load %arg10[%c0_26, %c0_27] : memref<8x72xf32, #tpu.memory_space<vmem>>, vector<8x72xf32>
    %20 = arith.addf %19, %18 : vector<8x72xf32>
    %c0_28 = arith.constant 0 : index
    %c0_29 = arith.constant 0 : index
    %21 = vector.load %arg10[%c0_28, %c0_29] : memref<8x72xf32, #tpu.memory_space<vmem>>, vector<8x72xf32>
    tpu.vector_store %arg10[%c0_28, %c0_29], %20 {strides = array<i32>} : memref<8x72xf32, #tpu.memory_space<vmem>>, vector<8x72xf32>,
    %c3 = arith.constant 3 : index
    %c0_30 = arith.constant 0 : index
    %c0_31 = arith.constant 0 : index
    %22 = vector.load %arg2[%c3, %c0_30, %c0_31] : memref<9x8x4xf32, #tpu.memory_space<vmem>>, vector<1x8x4xf32>
    %23 = vector.shape_cast %22 : vector<1x8x4xf32> to vector<8x4xf32>
    %c0_32 = arith.constant 0 : index
    %c0_33 = arith.constant 0 : index
    %c0_34 = arith.constant 0 : index
    %c0_35 = arith.constant 0 : index
    %24 = vector.load %arg6[%c0_32, %c0_33, %c0_34, %c0_35] : memref<1x1x4x82xf32, #tpu.memory_space<vmem>>, vector<1x1x4x72xf32>
    %25 = vector.shape_cast %24 : vector<1x1x4x72xf32> to vector<4x72xf32>
    %cst_36 = arith.constant dense<0.000000e+00> : vector<8x72xf32>
    %26 = tpu.matmul %23, %25, %cst_36 {dimension_numbers = #tpu.dot_dimension_numbers<[1], [0], [0], [1], [0, 0, 1, 1], [], []>} : vector<8x4xf32>, vector<4x72xf32>, vector<8x72xf32> -> vector<8x72xf32>
    %c0_37 = arith.constant 0 : index
    %c0_38 = arith.constant 0 : index
    %27 = vector.load %arg10[%c0_37, %c0_38] : memref<8x72xf32, #tpu.memory_space<vmem>>, vector<8x72xf32>
    %28 = arith.addf %27, %26 : vector<8x72xf32>
    %c0_39 = arith.constant 0 : index
    %c0_40 = arith.constant 0 : index
    %29 = vector.load %arg10[%c0_39, %c0_40] : memref<8x72xf32, #tpu.memory_space<vmem>>, vector<8x72xf32>
    tpu.vector_store %arg10[%c0_39, %c0_40], %28 {strides = array<i32>} : memref<8x72xf32, #tpu.memory_space<vmem>>, vector<8x72xf32>,
    %c4 = arith.constant 4 : index
    %c0_41 = arith.constant 0 : index
    %c0_42 = arith.constant 0 : index
    %30 = vector.load %arg2[%c4, %c0_41, %c0_42] : memref<9x8x4xf32, #tpu.memory_space<vmem>>, vector<1x8x4xf32>
    %31 = vector.shape_cast %30 : vector<1x8x4xf32> to vector<8x4xf32>
    %c0_43 = arith.constant 0 : index
    %c0_44 = arith.constant 0 : index
    %c0_45 = arith.constant 0 : index
    %c0_46 = arith.constant 0 : index
    %32 = vector.load %arg7[%c0_43, %c0_44, %c0_45, %c0_46] : memref<1x1x4x82xf32, #tpu.memory_space<vmem>>, vector<1x1x4x72xf32>
    %33 = vector.shape_cast %32 : vector<1x1x4x72xf32> to vector<4x72xf32>
    %cst_47 = arith.constant dense<0.000000e+00> : vector<8x72xf32>
    %34 = tpu.matmul %31, %33, %cst_47 {dimension_numbers = #tpu.dot_dimension_numbers<[1], [0], [0], [1], [0, 0, 1, 1], [], []>} : vector<8x4xf32>, vector<4x72xf32>, vector<8x72xf32> -> vector<8x72xf32>
    %c0_48 = arith.constant 0 : index
    %c0_49 = arith.constant 0 : index
    %35 = vector.load %arg10[%c0_48, %c0_49] : memref<8x72xf32, #tpu.memory_space<vmem>>, vector<8x72xf32>
    %36 = arith.addf %35, %34 : vector<8x72xf32>
    %c0_50 = arith.constant 0 : index
    %c0_51 = arith.constant 0 : index
    %37 = vector.load %arg10[%c0_50, %c0_51] : memref<8x72xf32, #tpu.memory_space<vmem>>, vector<8x72xf32>
    tpu.vector_store %arg10[%c0_50, %c0_51], %36 {strides = array<i32>} : memref<8x72xf32, #tpu.memory_space<vmem>>, vector<8x72xf32>,
    %c5 = arith.constant 5 : index
    %c0_52 = arith.constant 0 : index
    %c0_53 = arith.constant 0 : index
    %38 = vector.load %arg2[%c5, %c0_52, %c0_53] : memref<9x8x4xf32, #tpu.memory_space<vmem>>, vector<1x8x4xf32>
    %39 = vector.shape_cast %38 : vector<1x8x4xf32> to vector<8x4xf32>
    %c0_54 = arith.constant 0 : index
    %c0_55 = arith.constant 0 : index
    %c0_56 = arith.constant 0 : index
    %c1_57 = arith.constant 1 : index
    %40 = vector.load %arg6[%c0_54, %c0_55, %c0_56, %c1_57] : memref<1x1x4x82xf32, #tpu.memory_space<vmem>>, vector<1x1x4x72xf32>
    %41 = vector.shape_cast %40 : vector<1x1x4x72xf32> to vector<4x72xf32>
    %cst_58 = arith.constant dense<0.000000e+00> : vector<8x72xf32>
    %42 = tpu.matmul %39, %41, %cst_58 {dimension_numbers = #tpu.dot_dimension_numbers<[1], [0], [0], [1], [0, 0, 1, 1], [], []>} : vector<8x4xf32>, vector<4x72xf32>, vector<8x72xf32> -> vector<8x72xf32>
    %c0_59 = arith.constant 0 : index
    %c0_60 = arith.constant 0 : index
    %43 = vector.load %arg10[%c0_59, %c0_60] : memref<8x72xf32, #tpu.memory_space<vmem>>, vector<8x72xf32>
    %44 = arith.addf %43, %42 : vector<8x72xf32>
    %c0_61 = arith.constant 0 : index
    %c0_62 = arith.constant 0 : index
    %45 = vector.load %arg10[%c0_61, %c0_62] : memref<8x72xf32, #tpu.memory_space<vmem>>, vector<8x72xf32>
    tpu.vector_store %arg10[%c0_61, %c0_62], %44 {strides = array<i32>} : memref<8x72xf32, #tpu.memory_space<vmem>>, vector<8x72xf32>,
    %c6 = arith.constant 6 : index
    %c0_63 = arith.constant 0 : index
    %c0_64 = arith.constant 0 : index
    %46 = vector.load %arg2[%c6, %c0_63, %c0_64] : memref<9x8x4xf32, #tpu.memory_space<vmem>>, vector<1x8x4xf32>
    %47 = vector.shape_cast %46 : vector<1x8x4xf32> to vector<8x4xf32>
    %c0_65 = arith.constant 0 : index
    %c0_66 = arith.constant 0 : index
    %c0_67 = arith.constant 0 : index
    %c9 = arith.constant 9 : index
    %48 = vector.load %arg4[%c0_65, %c0_66, %c0_67, %c9] : memref<1x1x4x82xf32, #tpu.memory_space<vmem>>, vector<1x1x4x72xf32>
    %49 = vector.shape_cast %48 : vector<1x1x4x72xf32> to vector<4x72xf32>
    %cst_68 = arith.constant dense<0.000000e+00> : vector<8x72xf32>
    %50 = tpu.matmul %47, %49, %cst_68 {dimension_numbers = #tpu.dot_dimension_numbers<[1], [0], [0], [1], [0, 0, 1, 1], [], []>} : vector<8x4xf32>, vector<4x72xf32>, vector<8x72xf32> -> vector<8x72xf32>
    %c0_69 = arith.constant 0 : index
    %c0_70 = arith.constant 0 : index
    %51 = vector.load %arg10[%c0_69, %c0_70] : memref<8x72xf32, #tpu.memory_space<vmem>>, vector<8x72xf32>
    %52 = arith.addf %51, %50 : vector<8x72xf32>
    %c0_71 = arith.constant 0 : index
    %c0_72 = arith.constant 0 : index
    %53 = vector.load %arg10[%c0_71, %c0_72] : memref<8x72xf32, #tpu.memory_space<vmem>>, vector<8x72xf32>
    tpu.vector_store %arg10[%c0_71, %c0_72], %52 {strides = array<i32>} : memref<8x72xf32, #tpu.memory_space<vmem>>, vector<8x72xf32>,
    %c7 = arith.constant 7 : index
    %c0_73 = arith.constant 0 : index
    %c0_74 = arith.constant 0 : index
    %54 = vector.load %arg2[%c7, %c0_73, %c0_74] : memref<9x8x4xf32, #tpu.memory_space<vmem>>, vector<1x8x4xf32>
    %55 = vector.shape_cast %54 : vector<1x8x4xf32> to vector<8x4xf32>
    %c0_75 = arith.constant 0 : index
    %c0_76 = arith.constant 0 : index
    %c0_77 = arith.constant 0 : index
    %c9_78 = arith.constant 9 : index
    %56 = vector.load %arg5[%c0_75, %c0_76, %c0_77, %c9_78] : memref<1x1x4x82xf32, #tpu.memory_space<vmem>>, vector<1x1x4x72xf32>
    %57 = vector.shape_cast %56 : vector<1x1x4x72xf32> to vector<4x72xf32>
    %cst_79 = arith.constant dense<0.000000e+00> : vector<8x72xf32>
    %58 = tpu.matmul %55, %57, %cst_79 {dimension_numbers = #tpu.dot_dimension_numbers<[1], [0], [0], [1], [0, 0, 1, 1], [], []>} : vector<8x4xf32>, vector<4x72xf32>, vector<8x72xf32> -> vector<8x72xf32>
    %c0_80 = arith.constant 0 : index
    %c0_81 = arith.constant 0 : index
    %59 = vector.load %arg10[%c0_80, %c0_81] : memref<8x72xf32, #tpu.memory_space<vmem>>, vector<8x72xf32>
    %60 = arith.addf %59, %58 : vector<8x72xf32>
    %c0_82 = arith.constant 0 : index
    %c0_83 = arith.constant 0 : index
    %61 = vector.load %arg10[%c0_82, %c0_83] : memref<8x72xf32, #tpu.memory_space<vmem>>, vector<8x72xf32>
    tpu.vector_store %arg10[%c0_82, %c0_83], %60 {strides = array<i32>} : memref<8x72xf32, #tpu.memory_space<vmem>>, vector<8x72xf32>,
    %c8 = arith.constant 8 : index
    %c0_84 = arith.constant 0 : index
    %c0_85 = arith.constant 0 : index
    %62 = vector.load %arg2[%c8, %c0_84, %c0_85] : memref<9x8x4xf32, #tpu.memory_space<vmem>>, vector<1x8x4xf32>
    %63 = vector.shape_cast %62 : vector<1x8x4xf32> to vector<8x4xf32>
    %c0_86 = arith.constant 0 : index
    %c0_87 = arith.constant 0 : index
    %c0_88 = arith.constant 0 : index
    %c10 = arith.constant 10 : index
    %64 = vector.load %arg4[%c0_86, %c0_87, %c0_88, %c10] : memref<1x1x4x82xf32, #tpu.memory_space<vmem>>, vector<1x1x4x72xf32>
    %65 = vector.shape_cast %64 : vector<1x1x4x72xf32> to vector<4x72xf32>
    %cst_89 = arith.constant dense<0.000000e+00> : vector<8x72xf32>
    %66 = tpu.matmul %63, %65, %cst_89 {dimension_numbers = #tpu.dot_dimension_numbers<[1], [0], [0], [1], [0, 0, 1, 1], [], []>} : vector<8x4xf32>, vector<4x72xf32>, vector<8x72xf32> -> vector<8x72xf32>
    %c0_90 = arith.constant 0 : index
    %c0_91 = arith.constant 0 : index
    %67 = vector.load %arg10[%c0_90, %c0_91] : memref<8x72xf32, #tpu.memory_space<vmem>>, vector<8x72xf32>
    %68 = arith.addf %67, %66 : vector<8x72xf32>
    %c0_92 = arith.constant 0 : index
    %c0_93 = arith.constant 0 : index
    %69 = vector.load %arg10[%c0_92, %c0_93] : memref<8x72xf32, #tpu.memory_space<vmem>>, vector<8x72xf32>
    tpu.vector_store %arg10[%c0_92, %c0_93], %68 {strides = array<i32>} : memref<8x72xf32, #tpu.memory_space<vmem>>, vector<8x72xf32>,
    %c0_94 = arith.constant 0 : index
    %c0_95 = arith.constant 0 : index
    %70 = vector.load %arg10[%c0_94, %c0_95] : memref<8x72xf32, #tpu.memory_space<vmem>>, vector<8x72xf32>
    %c0_96 = arith.constant 0 : index
    %c0_97 = arith.constant 0 : index
    %c0_98 = arith.constant 0 : index
    %c0_99 = arith.constant 0 : index
    %71 = vector.load %arg8[%c0_96, %c0_97, %c0_98, %c0_99] : memref<1x1x8x72xf32, #tpu.memory_space<vmem>>, vector<1x1x8x72xf32>
    %72 = vector.shape_cast %71 : vector<1x1x8x72xf32> to vector<8x72xf32>
    %73 = vector.shape_cast %70 : vector<8x72xf32> to vector<1x1x8x72xf32>
    tpu.vector_store %arg8[%c0_96, %c0_97, %c0_98, %c0_99], %73 {strides = array<i32>} : memref<1x1x8x72xf32, #tpu.memory_space<vmem>>, vector<1x1x8x72xf32>,
    %c0_100 = arith.constant 0 : index
    %c0_101 = arith.constant 0 : index
    %c0_102 = arith.constant 0 : index
    %74 = vector.load %arg3[%c0_100, %c0_101, %c0_102] : memref<1x1x72xf32, #tpu.memory_space<vmem>>, vector<1x1x72xf32>
    %75 = vector.shape_cast %74 : vector<1x1x72xf32> to vector<1x72xf32>
    %76 = vector.broadcast %75 : vector<1x72xf32> to vector<8x72xf32>
    %77 = arith.mulf %70, %76 : vector<8x72xf32>
    %cst_103 = arith.constant dense<0.000000e+00> : vector<8xf32>
    %78 = vector.multi_reduction <add>, %77, %cst_103 [1] : vector<8x72xf32> to vector<8xf32>
    %79 = vector.shape_cast %78 : vector<8xf32> to vector<8x1xf32>
    %c0_104 = arith.constant 0 : index
    %c0_105 = arith.constant 0 : index
    %c0_106 = arith.constant 0 : index
    %c0_107 = arith.constant 0 : index
    %80 = vector.load %arg9[%c0_104, %c0_105, %c0_106, %c0_107] : memref<1x1x8x2xf32, #tpu.memory_space<vmem>>, vector<1x1x8x1xf32>
    %81 = vector.shape_cast %80 : vector<1x1x8x1xf32> to vector<8x1xf32>
    %82 = vector.shape_cast %79 : vector<8x1xf32> to vector<1x1x8x1xf32>
    tpu.vector_store %arg9[%c0_104, %c0_105, %c0_106, %c0_107], %82 {strides = array<i32>} : memref<1x1x8x2xf32, #tpu.memory_space<vmem>>, vector<1x1x8x1xf32>,
    %83 = arith.mulf %77, %70 : vector<8x72xf32>
    %cst_108 = arith.constant dense<0.000000e+00> : vector<8xf32>
    %84 = vector.multi_reduction <add>, %83, %cst_108 [1] : vector<8x72xf32> to vector<8xf32>
    %85 = vector.shape_cast %84 : vector<8xf32> to vector<8x1xf32>
    %c0_109 = arith.constant 0 : index
    %c0_110 = arith.constant 0 : index
    %c0_111 = arith.constant 0 : index
    %c1_112 = arith.constant 1 : index
    %86 = vector.load %arg9[%c0_109, %c0_110, %c0_111, %c1_112] : memref<1x1x8x2xf32, #tpu.memory_space<vmem>>, vector<1x1x8x1xf32>
    %87 = vector.shape_cast %86 : vector<1x1x8x1xf32> to vector<8x1xf32>
    %88 = vector.shape_cast %85 : vector<8x1xf32> to vector<1x1x8x1xf32>
    tpu.vector_store %arg9[%c0_109, %c0_110, %c0_111, %c1_112], %88 {strides = array<i32>} : memref<1x1x8x2xf32, #tpu.memory_space<vmem>>, vector<1x1x8x1xf32>,
    return
  }
  func.func @transform_0(%arg0: i32, %arg1: i32) -> (i32, i32, i32) {
    %c0_i32 = arith.constant 0 : i32
    %c0_i32_0 = arith.constant 0 : i32
    %c0_i32_1 = arith.constant 0 : i32
    %c0_i32_2 = arith.constant 0 : i32
    return %c0_i32, %c0_i32_0, %c0_i32_1 : i32, i32, i32
  }
  func.func @transform_1(%arg0: i32, %arg1: i32) -> (i32, i32, i32) {
    %c0_i32 = arith.constant 0 : i32
    %c0_i32_0 = arith.constant 0 : i32
    %c0_i32_1 = arith.constant 0 : i32
    return %arg1, %c0_i32, %c0_i32_0 : i32, i32, i32
  }
  func.func @transform_2(%arg0: i32, %arg1: i32) -> (i32, i32, i32, i32) {
    %c0_i32 = arith.constant 0 : i32
    %c0_i32_0 = arith.constant 0 : i32
    %c0_i32_1 = arith.constant 0 : i32
    return %arg0, %arg1, %c0_i32, %c0_i32_0 : i32, i32, i32, i32
  }
  func.func @transform_3(%arg0: i32, %arg1: i32) -> (i32, i32, i32, i32) {
    %c0_i32 = arith.constant 0 : i32
    %c0_i32_0 = arith.constant 0 : i32
    %c0_i32_1 = arith.constant 0 : i32
    return %arg0, %arg1, %c0_i32, %c0_i32_0 : i32, i32, i32, i32
  }
  func.func @transform_4(%arg0: i32, %arg1: i32) -> (i32, i32, i32, i32) {
    %c0_i32 = arith.constant 0 : i32
    %c0_i32_0 = arith.constant 0 : i32
    %c0_i32_1 = arith.constant 0 : i32
    return %arg0, %arg1, %c0_i32, %c0_i32_0 : i32, i32, i32, i32
  }
  func.func @transform_5(%arg0: i32, %arg1: i32) -> (i32, i32, i32, i32) {
    %c0_i32 = arith.constant 0 : i32
    %c0_i32_0 = arith.constant 0 : i32
    %c0_i32_1 = arith.constant 0 : i32
    return %arg0, %arg1, %c0_i32, %c0_i32_0 : i32, i32, i32, i32
  }
  func.func @transform_6(%arg0: i32, %arg1: i32) -> (i32, i32, i32, i32) {
    %c0_i32 = arith.constant 0 : i32
    %c0_i32_0 = arith.constant 0 : i32
    %c0_i32_1 = arith.constant 0 : i32
    return %arg0, %arg1, %c0_i32, %c0_i32_0 : i32, i32, i32, i32
  }
  func.func @transform_7(%arg0: i32, %arg1: i32) -> (i32, i32, i32, i32) {
    %c0_i32 = arith.constant 0 : i32
    %c0_i32_0 = arith.constant 0 : i32
    %c0_i32_1 = arith.constant 0 : i32
    return %arg0, %arg1, %c0_i32, %c0_i32_0 : i32, i32, i32, i32
  }
}

module attributes {stable_mosaic.version = 11 : i64} {
  func.func @_bn_lrelu_kernel(%arg0: i32, %arg1: memref<2x8x72xf32, #tpu.memory_space<vmem>>, %arg2: memref<1x8x2xf32, #tpu.memory_space<vmem>>, %arg3: memref<2x8x72xf32, #tpu.memory_space<vmem>>) attributes {dimension_semantics = [#tpu.dimension_semantics<parallel>], iteration_bounds = array<i64: 1>, scalar_prefetch = 0 : i64, scratch_operands = 0 : i64, tpu.core_type = #tpu.core_type<tc>, window_params = [{transform_indices = @transform_0, window_bounds = array<i64: 2, 8, 72>}, {pipeline_mode = #tpu.pipeline_mode<synchronous>, transform_indices = @transform_1, window_bounds = array<i64: 1, 8, 2>}, {transform_indices = @transform_2, window_bounds = array<i64: 2, 8, 72>}]} {
    %c0 = arith.constant 0 : index
    %c0_0 = arith.constant 0 : index
    %c0_1 = arith.constant 0 : index
    %0 = vector.load %arg2[%c0, %c0_0, %c0_1] : memref<1x8x2xf32, #tpu.memory_space<vmem>>, vector<1x8x1xf32>
    %c0_2 = arith.constant 0 : index
    %c0_3 = arith.constant 0 : index
    %c1 = arith.constant 1 : index
    %1 = vector.load %arg2[%c0_2, %c0_3, %c1] : memref<1x8x2xf32, #tpu.memory_space<vmem>>, vector<1x8x1xf32>
    %c0_4 = arith.constant 0 : index
    %c0_5 = arith.constant 0 : index
    %c0_6 = arith.constant 0 : index
    %2 = vector.load %arg1[%c0_4, %c0_5, %c0_6] : memref<2x8x72xf32, #tpu.memory_space<vmem>>, vector<2x8x72xf32>
    %3 = vector.broadcast %0 : vector<1x8x1xf32> to vector<2x8x72xf32>
    %4 = arith.mulf %2, %3 : vector<2x8x72xf32>
    %5 = vector.broadcast %1 : vector<1x8x1xf32> to vector<2x8x72xf32>
    %6 = arith.addf %4, %5 : vector<2x8x72xf32>
    %cst = arith.constant 0.000000e+00 : f32
    %7 = vector.broadcast %cst : f32 to vector<2x8x72xf32>
    %8 = arith.cmpf ogt, %6, %7 : vector<2x8x72xf32>
    %cst_7 = arith.constant 0.00999999977 : f32
    %9 = vector.broadcast %cst_7 : f32 to vector<2x8x72xf32>
    %10 = arith.mulf %9, %6 : vector<2x8x72xf32>
    %11 = arith.select %8, %6, %10 : vector<2x8x72xi1>, vector<2x8x72xf32>
    %c0_8 = arith.constant 0 : index
    %c0_9 = arith.constant 0 : index
    %c0_10 = arith.constant 0 : index
    %12 = vector.load %arg3[%c0_8, %c0_9, %c0_10] : memref<2x8x72xf32, #tpu.memory_space<vmem>>, vector<2x8x72xf32>
    tpu.vector_store %arg3[%c0_8, %c0_9, %c0_10], %11 {strides = array<i32>} : memref<2x8x72xf32, #tpu.memory_space<vmem>>, vector<2x8x72xf32>,
    return
  }
  func.func @transform_0(%arg0: i32) -> (i32, i32, i32) {
    %c0_i32 = arith.constant 0 : i32
    %c0_i32_0 = arith.constant 0 : i32
    %c0_i32_1 = arith.constant 0 : i32
    return %arg0, %c0_i32, %c0_i32_0 : i32, i32, i32
  }
  func.func @transform_1(%arg0: i32) -> (i32, i32, i32) {
    %c0_i32 = arith.constant 0 : i32
    %c0_i32_0 = arith.constant 0 : i32
    %c0_i32_1 = arith.constant 0 : i32
    %c0_i32_2 = arith.constant 0 : i32
    return %c0_i32, %c0_i32_0, %c0_i32_1 : i32, i32, i32
  }
  func.func @transform_2(%arg0: i32) -> (i32, i32, i32) {
    %c0_i32 = arith.constant 0 : i32
    %c0_i32_0 = arith.constant 0 : i32
    %c0_i32_1 = arith.constant 0 : i32
    return %arg0, %c0_i32, %c0_i32_0 : i32, i32, i32
  }
}

</mosaic_0001>

<bundles_post_ra>
// kernel: downsample_forward.3
= control target key start
LH: loop header
LB: loop body
LE: loop exit
PB: predicated region body
PF: predicated region fallthrough
CT: control target
= control target key end

     0   :  { %v44_v0 = vmov 0   ;;  %v45_v2 = vmov 1   ;;  %vm33_vm0 = vcmask 588800   ;;  %s76_s1 = inlined_call_operand.vmem [shape: f32[1,8,2], index: 1, kind: input, shape index: {}]   ;;  %s77_s0 = inlined_call_operand.vmem [shape: f32[2,8,72], index: 0, kind: input, shape index: {}, may-alias: {0,2}]   ;;  %s78_s2 = inlined_call_operand.vmem [shape: f32[2,8,72], index: 2, kind: output, shape index: {}, may-alias: {0,2}]  }
   0x1   :  { %42 = vset.pattern.permute.xlu0 %v44_v0  ;;  %v11_v1 = vld [vmem:[%s76_s1] sm:$0xff]  ;;  %v13_v5 = vld [vmem:[%s77_s0 + $0x8] sm:$0xff] }
   0x2   :  { %16 = vperm.xlu0 %42, %v11_v1   ;;  %v12_v4 = vld [vmem:[%s77_s0] sm:$0xff] }
   0x6   :  { %43 = vset.pattern.permute.xlu0 %v45_v2 }
   0x7   :  { %22 = vperm.xlu0 %43, %v11_v1  }
  0x81   :  { %v17_v3 = vpop.permute.xlu0 %16 }
  0x82   :  { %v19_v6 = vmul.f32 %v17_v3, %v12_v4  ;;  %v20_v7 = vmul.f32 %v17_v3, %v13_v5 }
  0x86   :  { %v23_v8 = vpop.permute.xlu0 %22 }
  0x87   :  { %v25_v9 = vadd.f32 %v23_v8, %v19_v6  ;;  %v26_v10 = vadd.f32 %v23_v8, %v20_v7 }
  0x89   :  { %vm27_vm1 = vcmp.gt.f32.partialorder %v25_v9, 0.0  ;;  %vm28_vm2 = vcmp.gt.f32.partialorder %v26_v10, 0.0  ;;  %v29_v11 = vmul.f32 0.01, %v25_v9  ;;  %v30_v12 = vmul.f32 0.01, %v26_v10 }
  0x8b   :  { %v31_v13 = vsel %vm27_vm1, %v25_v9, %v29_v11  ;;  %v32_v14 = vsel %vm28_vm2, %v26_v10, %v30_v12 }
  0x8c   :  { %34 = vst.msk [vmem:[%s78_s2] sm:$0xff] %vm33_vm0, %v31_v13  ;;  %35 = vst.msk [vmem:[%s78_s2 + $0x8] sm:$0xff] %vm33_vm0, %v32_v14 }

// kernel: downsample_forward.2
= control target key start
LH: loop header
LB: loop body
LE: loop exit
PB: predicated region body
PF: predicated region fallthrough
CT: control target
= control target key end

     0   :  { %s1566_s24 = smov 0   ;;  %s1568_s25 = smov 0   ;;  %s1708_s0 = inlined_call_operand.vmem [shape: f32[9,8,4], index: 0, kind: input, shape index: {}]   ;;  %s1709_s1 = inlined_call_operand.vmem [shape: f32[1,1,72], index: 1, kind: input, shape index: {}]   ;;  %s1710_s2 = inlined_call_operand.vmem [shape: f32[2,1,4,82], index: 2, kind: input, shape index: {}]   ;;  %s1711_s3 = inlined_call_operand.vmem [shape: f32[2,1,4,82], index: 3, kind: input, shape index: {}]   ;;  %s1712_s4 = inlined_call_operand.vmem [shape: f32[2,1,4,82], index: 4, kind: input, shape index: {}]   ;;  %s1713_s5 = inlined_call_operand.vmem [shape: f32[2,1,4,82], index: 5, kind: input, shape index: {}]   ;;  %s1714_s6 = inlined_call_operand.vmem [shape: f32[2,1,8,72], index: 6, kind: output, shape index: {0}]   ;;  %s1715_s7 = inlined_call_operand.vmem [shape: f32[2,1,8,2], index: 7, kind: output, shape index: {1}]  }
   0x1   :  { %s1570_s26 = smov 0  }
   0x2 LB: > { %s30_s27 = sadd.s32 1, %s1515_s25  ;;  %p1369_p0 = scmp.ge.s32.totalorder %s1519_s26, 1  ;;  %s1519_s26 = sphi %s1570_s26, %s18_s26   ;;  %s1515_s25 = sphi %s1568_s25, %s1717_s25   ;;  %s1511_s24 = sphi %s1566_s24, %s1716_s24  }
   0x3   : > { %p32_p1 = scmp.ge.s32.totalorder %s30_s27, 2  ;;  %p310_p2 = scmp.lt.s32.totalorder %s1519_s26, 3 }
   0x5   : > { %s1719_s27 = smov (%p32_p1, %s30_s27), 0  ;;  %p311_p3 = pnand %p1369_p0, %p310_p2 }
   0x6   : > { %p380_p4 = scmp.lt.s32.totalorder (!%p311_p3), %s1511_s24, 1  ;;  %v1521_v0 = vmov (!%p311_p3), 0.0   ;;  %vm1522_vm0 = vmmov (!%p311_p3), 0   ;;  %vm428_vm1 = vcmask (!%p311_p3), 1043456   ;;  %s1523_s15 = smov (!%p311_p3), 127   ;;  %v422_v3 = vld [vmem:[%s1708_s0] sm:$0xff] (!%p311_p3) }
   0x7   : > { %314 = sbr.rel (%p311_p3) target bundleno = 564 (0x234), region = 44  ;;  %1423 = vmatprep.subr.mxu0 (!%p311_p3), %v1521_v0  ;;  %1425 = vmatprep.mubr.msk.f32.mxu0 (!%p311_p3), %vm1522_vm0, %v1521_v0  ;;  %vm424_vm2 = vcmask (!%p311_p3), 31744   ;;  %v1378_v4 = vld [vmem:[%s1708_s0 + $0x8] sm:$0xff] (!%p311_p3)  ;;  %s1524_s20 = smov (!%p311_p3), 119   ;;  %v1384_v11 = vld [vmem:[%s1708_s0 + $0x18] sm:$0xff] (!%p311_p3)  ;;  %v1381_v12 = vld [vmem:[%s1708_s0 + $0x10] sm:$0xff] (!%p311_p3) }
   0x8   : > { %1428 = vmatprep.subr.mxu1 (!%p311_p3), %v1521_v0  ;;  %1430 = vmatprep.mubr.msk.f32.mxu1 (!%p311_p3), %vm1522_vm0, %v1521_v0  ;;  %s1525_s23 = smov (!%p311_p3), 118   ;;  %v1387_v16 = vld [vmem:[%s1708_s0 + $0x20] sm:$0xff] (!%p311_p3)  ;;  %v1390_v17 = vld [vmem:[%s1708_s0 + $0x28] sm:$0xff] (!%p311_p3)  ;;  %v1393_v20 = vld [vmem:[%s1708_s0 + $0x30] sm:$0xff] (!%p311_p3)  ;;  %vm502_vm3 = vcmask (!%p311_p3), 588800   ;;  %vm1183_vm4 = vcmask (!%p311_p3), 7168  }
   0x9   : > { %v1396_v21 = vld [vmem:[%s1708_s0 + $0x38] sm:$0xff] (!%p311_p3)  ;;  %v1399_v23 = vld [vmem:[%s1708_s0 + $0x40] sm:$0xff] (!%p311_p3)  ;;  %vm1189_vm5 = vcmask (!%p311_p3), 15368  }
   0xa   : > { %v1402_v58 = vld [vmem:[%s1709_s1] ss:$0 sm:$0xff] (!%p311_p3) }
   0xe   : > { %s1721_s24 = smov (!%p380_p4, %s1511_s24), 1 }
   0xf   : > { %s1593_s28 = sshll.u32 %s1721_s24, 2 }
  0x10   : > { %s386_s8 = scalar_lea.vmem %s1710_s2, %s1593_s28  ;;  %s400_s11 = scalar_lea.vmem %s1712_s4, %s1593_s28 }
  0x11   : > { %v588_v1 = vld [vmem:[%s386_s8] sm:$0xf]  ;;  %s393_s14 = scalar_lea.vmem %s1711_s3, %s1593_s28 }
  0x12   : > { %590 = vrot.lane.b32.xlu0 %v588_v1, %s1523_s15  ;;  %v920_v2 = vld [vmem:[%s386_s8] sm:$0xf] }
  0x13   : > { %v836_v5 = vld [vmem:[%s400_s11] sm:$0xf]  ;;  %922 = vrot.lane.b32.xlu1 %v920_v2, %s1524_s20 }
  0x14   : > { %v423_v6 = vld [vmem:[%s386_s8] sm:$0xf] }
  0x15   : > { %v506_v7 = vld [vmem:[%s393_s14] sm:$0xf]  ;;  %1424 = vmatpush3.msk.msra.mxu0 %vm428_vm1, %v423_v6 }
  0x16   : > { %v1004_v8 = vld [vmem:[%s393_s14] sm:$0xf]  ;;  %1429 = vmatpush3.msk.msra.mxu1 %vm428_vm1, %v506_v7  ;;  %1426 = vmatmul.mubr.msk.f32.vlgmr.msra.gmra.mrb[0].mxu0 %vm424_vm2, %v422_v3 }
  0x17   : > { %1431 = vmatmul.mubr.msk.f32.vlgmr.msra.gmra.mrb[0].mxu1 %vm424_vm2, %v1378_v4  ;;  %v672_v9 = vld [vmem:[%s400_s11] sm:$0xf]  ;;  %838 = vrot.lane.b32.xlu0 %v836_v5, %s1523_s15 }
  0x18   : > { %1433 = vmatprep.subr.mxu0 %v1521_v0  ;;  %1006 = vrot.lane.b32.xlu1 %v1004_v8, %s1524_s20  ;;  %v1088_v10 = vld [vmem:[%s386_s8] sm:$0xf]  ;;  %s407_s8 = scalar_lea.vmem %s1713_s5, %s1593_s28  ;;  %s1374_s20 = sshll.u32 %s1721_s24, 3 }
  0x19   : > { %1435 = vmatprep.mubr.msk.f32.mxu0 %vm1522_vm0, %v1521_v0  ;;  %1438 = vmatprep.subr.mxu1 %v1521_v0  ;;  %v754_v14 = vld [vmem:[%s407_s8] sm:$0xf]  ;;  %s414_s30 = scalar_lea.vmem %s1714_s6, %s1374_s20  ;;  %s421_s9 = scalar_lea.vmem %s1715_s7, %s1374_s20 }
  0x1a   : > { %1440 = vmatprep.mubr.msk.f32.mxu1 %vm1522_vm0, %v1521_v0  ;;  %1439 = vmatpush3.msk.msra.mxu1 %vm428_vm1, %v672_v9 }
  0x1b   : > { %1090 = vrot.lane.b32.xlu0 %v1088_v10, %s1525_s23  ;;  %1441 = vmatmul.mubr.msk.f32.vlgmr.msra.gmra.mrb[2].mxu1 %vm424_vm2, %v1384_v11 }
  0x1c   : > { %1448 = vmatprep.subr.mxu1 %v1521_v0  ;;  %1450 = vmatprep.mubr.msk.f32.mxu1 %vm1522_vm0, %v1521_v0 }
  0x84   : > { %v591_v13 = vpop.permute.xlu0 %590 }
  0x85   : > { %1434 = vmatpush3.msk.msra.mxu0 %vm428_vm1, %v591_v13  ;;  %v923_v15 = vpop.permute.xlu1 %922 }
  0x86   : > { %1436 = vmatmul.mubr.msk.f32.vlgmr.msra.gmra.mrb[2].mxu0 %vm424_vm2, %v1381_v12  ;;  %1443 = vmatprep.subr.mxu0 %v1521_v0 }
  0x87   : > { %1444 = vmatpush3.msk.msra.mxu0 %vm428_vm1, %v754_v14  ;;  %1445 = vmatprep.mubr.msk.f32.mxu0 %vm1522_vm0, %v1521_v0 }
  0x88   : > { %1453 = vmatprep.subr.mxu0 %v1521_v0 }
  0x89   : > { %v839_v18 = vpop.permute.xlu0 %838 }
  0x8a   : > { %1449 = vmatpush3.msk.msra.mxu1 %vm428_vm1, %v839_v18  ;;  %1446 = vmatmul.mubr.msk.f32.vlgmr.msra.gmra.mrb[4].mxu0 %vm424_vm2, %v1387_v16  ;;  %v1007_v19 = vpop.permute.xlu1 %1006 }
  0x8b   : > { %1451 = vmatmul.mubr.msk.f32.vlgmr.msra.gmra.mrb[4].mxu1 %vm424_vm2, %v1390_v17  ;;  %1454 = vmatpush3.msk.msra.mxu0 %vm428_vm1, %v923_v15 }
  0x8c   : > { %1455 = vmatprep.mubr.msk.f32.mxu0 %vm1522_vm0, %v1521_v0  ;;  %1458 = vmatprep.subr.mxu1 %v1521_v0 }
  0x8d   : > { %1460 = vmatprep.mubr.msk.f32.mxu1 %vm1522_vm0, %v1521_v0  ;;  %v1091_v22 = vpop.permute.xlu0 %1090  ;;  %1459 = vmatpush3.msk.msra.mxu1 %vm428_vm1, %v1007_v19 }
  0x8e   : > { %1463 = vmatprep.subr.mxu0 %v1521_v0  ;;  %1456 = vmatmul.mubr.msk.f32.vlgmr.msra.gmra.mrb[6].mxu0 %vm424_vm2, %v1393_v20 }
  0x8f   : > { %1461 = vmatmul.mubr.msk.f32.vlgmr.msra.gmra.mrb[6].mxu1 %vm424_vm2, %v1396_v21  ;;  %1464 = vmatpush3.msk.msra.mxu0 %vm428_vm1, %v1091_v22 }
  0x90   : > { %1465 = vmatprep.mubr.msk.f32.mxu0 %vm1522_vm0, %v1521_v0 }
  0x92   : > { %1466 = vmatmul.mubr.msk.f32.vlgmr.msra.gmra.mrb[8].mxu0 %vm424_vm2, %v1399_v23 }
  0xe9   : > { %v498_v24 = vpop.f32.mrb[0].mxu0 }
  0xea   : > { %v579_v25 = vpop.f32.mrb[0].mxu1  ;;  %503 = vst.msk [vmem:[#allocation2] sm:$0xff] %vm502_vm3, %v498_v24  ;;  %v1427_v26 = vpop.f32.mrb[1].mxu0 }
  0xeb   : > { %v1432_v27 = vpop.f32.mrb[1].mxu1 }
  0xee   : > { %v745_v28 = vpop.f32.mrb[2].mxu1 }
  0xef   : > { %v1442_v29 = vpop.f32.mrb[3].mxu1 }
  0xf1   : > { %v583_v30 = vld [vmem:[#allocation2] sm:$0xff] }
  0xf2   : > { %v584_v31 = vadd.f32 %v583_v30, %v579_v25 }
  0xf4   : > { %585 = vst.msk [vmem:[#allocation2] sm:$0xff] %vm502_vm3, %v584_v31 }
  0xfb   : > { %v667_v32 = vld [vmem:[#allocation2] sm:$0xff] }
 0x159   : > { %v663_v33 = vpop.f32.mrb[2].mxu0 }
 0x15a   : > { %v668_v34 = vadd.f32 %v667_v32, %v663_v33  ;;  %v1437_v35 = vpop.f32.mrb[3].mxu0 }
 0x15c   : > { %669 = vst.msk [vmem:[#allocation2] sm:$0xff] %vm502_vm3, %v668_v34 }
 0x15d   : > { %v827_v36 = vpop.f32.mrb[4].mxu0 }
 0x15e   : > { %v911_v37 = vpop.f32.mrb[4].mxu1  ;;  %v1447_v38 = vpop.f32.mrb[5].mxu0 }
 0x15f   : > { %v1452_v39 = vpop.f32.mrb[5].mxu1 }
 0x161   : > { %v995_v40 = vpop.f32.mrb[6].mxu0 }
 0x162   : > { %v1079_v41 = vpop.f32.mrb[6].mxu1  ;;  %v1457_v42 = vpop.f32.mrb[7].mxu0 }
 0x163   : > { %v1462_v43 = vpop.f32.mrb[7].mxu1  ;;  %v749_v44 = vld [vmem:[#allocation2] sm:$0xff] }
 0x164   : > { %v750_v45 = vadd.f32 %v749_v44, %v745_v28 }
 0x165   : > { %v1163_v46 = vpop.f32.mrb[8].mxu0 }
 0x166   : > { %751 = vst.msk [vmem:[#allocation2] sm:$0xff] %vm502_vm3, %v750_v45  ;;  %v1467_v47 = vpop.f32.mrb[9].mxu0 }
 0x16d   : > { %v831_v48 = vld [vmem:[#allocation2] sm:$0xff] }
 0x16e   : > { %v832_v49 = vadd.f32 %v831_v48, %v827_v36 }
 0x170   : > { %833 = vst.msk [vmem:[#allocation2] sm:$0xff] %vm502_vm3, %v832_v49 }
 0x177   : > { %v915_v50 = vld [vmem:[#allocation2] sm:$0xff] }
 0x178   : > { %v916_v51 = vadd.f32 %v915_v50, %v911_v37 }
 0x17a   : > { %917 = vst.msk [vmem:[#allocation2] sm:$0xff] %vm502_vm3, %v916_v51 }
 0x181   : > { %v999_v52 = vld [vmem:[#allocation2] sm:$0xff] }
 0x182   : > { %v1000_v53 = vadd.f32 %v999_v52, %v995_v40 }
 0x184   : > { %1001 = vst.msk [vmem:[#allocation2] sm:$0xff] %vm502_vm3, %v1000_v53 }
 0x18b   : > { %v1083_v54 = vld [vmem:[#allocation2] sm:$0xff] }
 0x18c   : > { %v1084_v55 = vadd.f32 %v1083_v54, %v1079_v41 }
 0x18e   : > { %1085 = vst.msk [vmem:[#allocation2] sm:$0xff] %vm502_vm3, %v1084_v55 }
 0x195   : > { %v1167_v56 = vld [vmem:[#allocation2] sm:$0xff] }
 0x196   : > { %v1168_v57 = vadd.f32 %v1167_v56, %v1163_v46 }
 0x198   : > { %1169 = vst.msk [vmem:[#allocation2] sm:$0xff] %vm502_vm3, %v1168_v57 }
 0x19f   : > { %v1170_v59 = vld [vmem:[#allocation2] sm:$0xff] }
 0x1a0   : > { %v1179_v60 = vmul.f32 %v1402_v58, %v1170_v59  ;;  %1171 = vst.msk [vmem:[%s414_s30] sm:$0xff] %vm502_vm3, %v1170_v59 }
 0x1a2   : > { %v1180_v61 = vsel %vm502_vm3, %v1179_v60, 0.0  ;;  %v1185_v62 = vmul.f32 %v1179_v60, %v1170_v59 }
 0x1a3   : > { %1181 = vadd.xlane.f32.xlu1 %v1180_v61 }
 0x1a4   : > { %v1186_v63 = vsel %vm502_vm3, %v1185_v62, 0.0 }
 0x1a5   : > { %1187 = vadd.xlane.f32.xlu0 %v1186_v63 }
 0x230   : > { %v1182_v0 = vpop.xlane.xlu1 %1181 }
 0x231   : > { %1184 = vst.msk [vmem:[%s421_s9] sm:$0xff] %vm1183_vm4, %v1182_v0 }
 0x232   : > { %v1188_v1 = vpop.xlane.xlu0 %1187 }
 0x233   : > { %1190 = vst.msk [vmem:[%s421_s9] sm:$0xff] %vm1189_vm5, %v1188_v1 }
 0x234 PF: > { %s18_s26 = sadd.s32 1, %s1519_s26   ;;  %s1716_s24 = smov %s1515_s25 }
 0x235   : > { %p15_p5 = scmp.ge.s32.totalorder %s18_s26, 4   ;;  %s1717_s25 = smov %s1719_s27 }
 0x237   :  { %17 = sbr.rel (!%p15_p5) target bundleno = 2 (0x2), region = 106 }

</bundles_post_ra>
